<compile_context>
chip_gen: v7x
topology: tpu7x:2x2x1
jax: 0.10.0
libtpu: 0.0.40
codegen_flags: <defaults>
</compile_context>

<pallas_src>
import functools

import jax
import jax.numpy as jnp
from jax.experimental import pallas as pl
from jax.experimental.pallas import tpu as pltpu


def _round_up(x, m):
    return ((x + m - 1) // m) * m


# Gate block order inside the fused weight / fused pre-activation tensor.
_I, _F, _T, _Z, _O, _TT = range(6)
_NGATES = 6


def _time_lstm_kernel(xhc_ref, wf_ref, bf_ref, wco_ref, bco_ref,
                      h_out_ref, c_out_ref, *, hp):
    """One batch tile of the TimeLSTM cell.

    xhc_ref : (TB, Kp) f32   = [c (padded to hp) | x | dt | h | zero pad]
    wf_ref  : (Kp, 6*hp) bf16 fused gate weights [i|f|t|z|o|tt]
    bf_ref  : (1, 6*hp)  f32  fused gate biases
    wco_ref : (hp, hp)   bf16 weights for o-gate's c_new projection
    bco_ref : (1, hp)    f32
    """
    xhc = xhc_ref[...]                       # f32
    c = xhc[:, :hp]                          # lane-aligned slice, stays f32

    # Single fused MXU matmul for every linear path except `co`.
    g = jnp.dot(xhc.astype(jnp.bfloat16), wf_ref[...],
                preferred_element_type=jnp.float32) + bf_ref[...]

    gi = g[:, _I * hp:(_I + 1) * hp]
    gf = g[:, _F * hp:(_F + 1) * hp]
    gt = g[:, _T * hp:(_T + 1) * hp]
    gz = g[:, _Z * hp:(_Z + 1) * hp]
    go = g[:, _O * hp:(_O + 1) * hp]
    gtt = g[:, _TT * hp:(_TT + 1) * hp]

    i = jax.nn.sigmoid(gi)
    f = jax.nn.sigmoid(gf)
    t = jax.nn.sigmoid(gt + jax.nn.sigmoid(gtt))
    z = jnp.tanh(gz)

    c_new = f * c + i * t * z

    gco = jnp.dot(c_new.astype(jnp.bfloat16), wco_ref[...],
                  preferred_element_type=jnp.float32) + bco_ref[...]
    o = jax.nn.sigmoid(go + gco)
    h_new = o * jnp.tanh(c_new)

    h_out_ref[...] = h_new.astype(h_out_ref.dtype)
    c_out_ref[...] = c_new.astype(c_out_ref.dtype)


def time_lstm_cell(inputs, h, c, packed, *, hidden_size):
    """inputs: (B, input_size + 1) — last column is delta_time."""
    B, d_plus_1 = inputs.shape
    D = d_plus_1 - 1
    H = hidden_size
    Hp = _round_up(H, 128)
    K = Hp + D + 1 + H
    Kp = _round_up(K, 128)

    # Batch tile: big for MXU M-utilization (cap 512 rows), 8-aligned, and
    # choose the tile count first so padding never balloons (e.g. B=520 used
    # to pad to 1024; now 2 tiles of 264 -> pad 8 rows only).
    n_tiles = max(1, (B + 511) // 512)
    TB = _round_up((B + n_tiles - 1) // n_tiles, 8)
    Bp = TB * n_tiles

    # Build the fused activation matrix [c_pad | inputs(x,dt) | h | 0].
    c_pad = jnp.zeros((B, Hp), jnp.float32).at[:, :H].set(c.astype(jnp.float32))
    xhc = jnp.concatenate(
        [c_pad, inputs.astype(jnp.float32), h.astype(jnp.float32)], axis=1)
    xhc = jnp.pad(xhc, ((0, Bp - B), (0, Kp - K)))

    grid = (n_tiles,)
    kernel = functools.partial(_time_lstm_kernel, hp=Hp)

    act_spec = pl.BlockSpec((TB, Kp), lambda b: (b, 0))
    out_spec = pl.BlockSpec((TB, Hp), lambda b: (b, 0))
    # Weights: constant block index across the grid -> stay resident in VMEM
    # (Pallas skips re-DMA when the block index does not change).
    wf_spec = pl.BlockSpec(packed["wf"].shape, lambda b: (0, 0))
    bf_spec = pl.BlockSpec(packed["bf"].shape, lambda b: (0, 0))
    wco_spec = pl.BlockSpec(packed["wco"].shape, lambda b: (0, 0))
    bco_spec = pl.BlockSpec(packed["bco"].shape, lambda b: (0, 0))

    # Explicit VMEM budget with headroom (weights + double-buffered tiles).
    weight_bytes = (packed["wf"].size + packed["wco"].size) * 2 \
        + (packed["bf"].size + packed["bco"].size) * 4
    act_bytes = 2 * TB * Kp * 4 + 2 * (2 * TB * Hp * 4)
    scratch_bytes = TB * (_NGATES * Hp + 4 * Hp) * 4
    vmem_limit = int(min(64 * 1024 * 1024,
                         max(32 * 1024 * 1024,
                             2 * (weight_bytes + act_bytes + scratch_bytes))))

    # Advisory cost hint for XLA scheduling around the custom call.
    flops = 2 * Bp * Kp * (_NGATES * Hp) + 2 * Bp * Hp * Hp
    transcendentals = 7 * Bp * Hp            # 5 sigmoids + 2 tanh per element
    bytes_accessed = (Bp * Kp * 4 + weight_bytes + 2 * Bp * Hp * 4)
    cost = pl.CostEstimate(flops=flops, transcendentals=transcendentals,
                           bytes_accessed=bytes_accessed)

    h_out, c_out = pl.pallas_call(
        kernel,
        grid=grid,
        out_shape=(jax.ShapeDtypeStruct((Bp, Hp), jnp.float32),
                   jax.ShapeDtypeStruct((Bp, Hp), jnp.float32)),
        in_specs=[act_spec, wf_spec, bf_spec, wco_spec, bco_spec],
        out_specs=(out_spec, out_spec),
        compiler_params=pltpu.CompilerParams(
            dimension_semantics=("parallel",),
            vmem_limit_bytes=vmem_limit),
        cost_estimate=cost,
    )(xhc, packed["wf"], packed["bf"], packed["wco"], packed["bco"])

    return h_out[:B, :H], c_out[:B, :H]


def init_params(key, input_size, hidden_size):
    """Deterministic nn.Linear-style init (uniform in +-1/sqrt(fan_in)),
    stored per-gate as (in, out) for the reference; packing happens later."""
    H = hidden_size

    def linear(key, fan_in, fan_out, bias):
        kw, kb = jax.random.split(key)
        bound = 1.0 / jnp.sqrt(fan_in)
        w = jax.random.uniform(kw, (fan_in, fan_out), jnp.float32, -bound, bound)
        b = (jax.random.uniform(kb, (1, fan_out), jnp.float32, -bound, bound)
             if bias else None)
        return w, b

    names = ['xi', 'xf', 'xt', 'xz', 'xo',      # Linear(input_size, H, bias=True)
             'hi', 'hf', 'hz', 'ho',            # Linear(H, H, bias=False)
             'ci', 'cf', 'co',                  # Linear(H, H, bias=True)
             'tt', 't_o']                       # Linear(1, H, bias=False)
    keys = jax.random.split(key, len(names))
    w, b = {}, {}
    for n, k in zip(names, keys):
        if n[0] == 'h':
            w[n], b[n] = linear(k, H, H, bias=False)
        elif n[0] == 't':
            w[n], b[n] = linear(k, 1, H, bias=False)
        elif n[0] == 'c':
            w[n], b[n] = linear(k, H, H, bias=True)
        else:
            w[n], b[n] = linear(k, input_size, H, bias=True)
    return {"w": w, "b": b}


def pack_params(raw, input_size, hidden_size):
    """Build the fused, lane-padded, bf16 weight layout used by the kernel."""
    w, b = raw["w"], raw["b"]
    D, H = input_size, hidden_size
    Hp = _round_up(H, 128)
    K = Hp + D + 1 + H
    Kp = _round_up(K, 128)

    wf = jnp.zeros((Kp, _NGATES * Hp), jnp.float32)
    bf = jnp.zeros((1, _NGATES * Hp), jnp.float32)

    def put(row0, name, gate):
        nonlocal wf
        wm = w[name]                               # (rows, H)
        wf = wf.at[row0:row0 + wm.shape[0],
                   gate * Hp:gate * Hp + H].set(wm)

    # Row layout of the fused K dimension: [c (Hp) | x (D) | dt (1) | h (H) | pad]
    put(0, 'ci', _I)
    put(0, 'cf', _F)
    xr = Hp
    put(xr, 'xi', _I)
    put(xr, 'xf', _F)
    put(xr, 'xt', _T)
    put(xr, 'xz', _Z)
    put(xr, 'xo', _O)
    dr = Hp + D
    put(dr, 't_o', _O)
    put(dr, 'tt', _TT)
    hr = Hp + D + 1
    put(hr, 'hi', _I)
    put(hr, 'hf', _F)
    put(hr, 'hz', _Z)
    put(hr, 'ho', _O)

    def putb(name, gate, add=False):
        nonlocal bf
        sl = (slice(None), slice(gate * Hp, gate * Hp + H))
        val = b[name]
        bf = bf.at[sl].set(bf[sl] + val if add else val)

    putb('xi', _I)
    putb('ci', _I, add=True)
    putb('xf', _F)
    putb('cf', _F, add=True)
    putb('xt', _T)
    putb('xz', _Z)
    putb('xo', _O)

    wco = jnp.zeros((Hp, Hp), jnp.float32).at[:H, :H].set(w['co'])
    bco = jnp.zeros((1, Hp), jnp.float32).at[:, :H].set(b['co'])

    return {"wf": wf.astype(jnp.bfloat16), "bf": bf,
            "wco": wco.astype(jnp.bfloat16), "bco": bco}


def reference_forward(inputs, h, c, raw, *, cast_dtype=None):
    """Pure-JAX reference mirroring the PyTorch forward exactly.

    cast_dtype=jnp.bfloat16 emulates the kernel's matmul-operand precision
    (weights + matmul inputs rounded to bf16, f32 accumulation/elementwise)."""
    w, b = raw["w"], raw["b"]
    if cast_dtype is None:
        rd = lambda a: a
    else:
        rd = lambda a: a.astype(cast_dtype).astype(jnp.float32)
    x, dt = inputs[:, :-1], inputs[:, -1:]

    def lin(n, v):
        y = rd(v) @ rd(w[n])
        return y + b[n] if b[n] is not None else y

    i = jax.nn.sigmoid(lin('xi', x) + lin('hi', h) + lin('ci', c))
    f = jax.nn.sigmoid(lin('xf', x) + lin('hf', h) + lin('cf', c))
    t = jax.nn.sigmoid(lin('xt', x) + jax.nn.sigmoid(lin('tt', dt)))
    z = jnp.tanh(lin('xz', x) + lin('hz', h))
    c_new = f * c + i * t * z
    o = jax.nn.sigmoid(lin('xo', x) + lin('t_o', dt) + lin('ho', h) + lin('co', c_new))
    h_new = o * jnp.tanh(c_new)
    return h_new, c_new


if __name__ == "__main__":
    INPUT_SIZE = 8
    HIDDEN_SIZE = 32
    BATCH = 8

    key = jax.random.PRNGKey(0)
    k_param, k_x, k_h, k_c = jax.random.split(key, 4)

    raw = init_params(k_param, INPUT_SIZE, HIDDEN_SIZE)
    packed = pack_params(raw, INPUT_SIZE, HIDDEN_SIZE)

    # inputs carries features plus a trailing delta-time column.
    inputs = jax.random.normal(k_x, (BATCH, INPUT_SIZE + 1), jnp.float32)
    h0 = jax.random.normal(k_h, (BATCH, HIDDEN_SIZE), jnp.float32)
    c0 = jax.random.normal(k_c, (BATCH, HIDDEN_SIZE), jnp.float32)

    fwd = jax.jit(functools.partial(time_lstm_cell, hidden_size=HIDDEN_SIZE))
    h1, c1 = fwd(inputs, h0, c0, packed)
    jax.block_until_ready((h1, c1))

    # Tight check against a reference that emulates the kernel's bf16 matmul
    # operand precision (catches any gate-packing / bias-placement bug).
    h_bf, c_bf = reference_forward(inputs, h0, c0, raw, cast_dtype=jnp.bfloat16)
    assert jnp.allclose(h1, h_bf, atol=5e-3, rtol=5e-3), "h mismatch (packed/bf16 ref)"
    assert jnp.allclose(c1, c_bf, atol=5e-3, rtol=5e-3), "c mismatch (packed/bf16 ref)"

    # Semantic check against the exact f32 PyTorch-equivalent reference
    # (tolerance loosened only because weights are intentionally bf16).
    h_ref, c_ref = reference_forward(inputs, h0, c0, raw)
    assert jnp.allclose(h1, h_ref, atol=4e-2, rtol=4e-2), "h mismatch (f32 ref)"
    assert jnp.allclose(c1, c_ref, atol=4e-2, rtol=4e-2), "c mismatch (f32 ref)"

    print("KERNEL_OK")
</pallas_src>

<mosaic_0001>
module attributes {stable_mosaic.version = 11 : i64} {
  func.func @_time_lstm_kernel(%arg0: i32, %arg1: memref<8x256xf32, #tpu.memory_space<vmem>>, %arg2: memref<256x768xbf16, #tpu.memory_space<vmem>>, %arg3: memref<1x768xf32, #tpu.memory_space<vmem>>, %arg4: memref<128x128xbf16, #tpu.memory_space<vmem>>, %arg5: memref<1x128xf32, #tpu.memory_space<vmem>>, %arg6: memref<8x128xf32, #tpu.memory_space<vmem>>, %arg7: memref<8x128xf32, #tpu.memory_space<vmem>>) attributes {dimension_semantics = [#tpu.dimension_semantics<parallel>], iteration_bounds = array<i64: 1>, scalar_prefetch = 0 : i64, scratch_operands = 0 : i64, tpu.core_type = #tpu.core_type<tc>, window_params = [{transform_indices = @transform_0, window_bounds = array<i64: 8, 256>}, {pipeline_mode = #tpu.pipeline_mode<synchronous>, transform_indices = @transform_1, window_bounds = array<i64: 256, 768>}, {pipeline_mode = #tpu.pipeline_mode<synchronous>, transform_indices = @transform_2, window_bounds = array<i64: 1, 768>}, {pipeline_mode = #tpu.pipeline_mode<synchronous>, transform_indices = @transform_3, window_bounds = array<i64: 128, 128>}, {pipeline_mode = #tpu.pipeline_mode<synchronous>, transform_indices = @transform_4, window_bounds = array<i64: 1, 128>}, {transform_indices = @transform_5, window_bounds = array<i64: 8, 128>}, {transform_indices = @transform_6, window_bounds = array<i64: 8, 128>}]} {
    %c0 = arith.constant 0 : index
    %c0_0 = arith.constant 0 : index
    %0 = vector.load %arg1[%c0, %c0_0] : memref<8x256xf32, #tpu.memory_space<vmem>>, vector<8x256xf32>
    %1 = vector.extract_strided_slice %0 {offsets = [0, 0], sizes = [8, 128], strides = [1, 1]} : vector<8x256xf32> to vector<8x128xf32>
    %2 = arith.truncf %0 : vector<8x256xf32> to vector<8x256xbf16>
    %c0_1 = arith.constant 0 : index
    %c0_2 = arith.constant 0 : index
    %3 = vector.load %arg2[%c0_1, %c0_2] : memref<256x768xbf16, #tpu.memory_space<vmem>>, vector<256x768xbf16>
    %cst = arith.constant dense<0.000000e+00> : vector<8x768xf32>
    %4 = tpu.matmul %2, %3, %cst {dimension_numbers = #tpu.dot_dimension_numbers<[1], [0], [0], [1], [0, 0, 1, 1], [], []>} : vector<8x256xbf16>, vector<256x768xbf16>, vector<8x768xf32> -> vector<8x768xf32>
    %c0_3 = arith.constant 0 : index
    %c0_4 = arith.constant 0 : index
    %5 = vector.load %arg3[%c0_3, %c0_4] : memref<1x768xf32, #tpu.memory_space<vmem>>, vector<1x768xf32>
    %6 = vector.broadcast %5 : vector<1x768xf32> to vector<8x768xf32>
    %7 = arith.addf %4, %6 : vector<8x768xf32>
    %8 = vector.extract_strided_slice %7 {offsets = [0, 0], sizes = [8, 128], strides = [1, 1]} : vector<8x768xf32> to vector<8x128xf32>
    %9 = vector.extract_strided_slice %7 {offsets = [0, 128], sizes = [8, 128], strides = [1, 1]} : vector<8x768xf32> to vector<8x128xf32>
    %10 = vector.extract_strided_slice %7 {offsets = [0, 256], sizes = [8, 128], strides = [1, 1]} : vector<8x768xf32> to vector<8x128xf32>
    %11 = vector.extract_strided_slice %7 {offsets = [0, 384], sizes = [8, 128], strides = [1, 1]} : vector<8x768xf32> to vector<8x128xf32>
    %12 = vector.extract_strided_slice %7 {offsets = [0, 512], sizes = [8, 128], strides = [1, 1]} : vector<8x768xf32> to vector<8x128xf32>
    %13 = vector.extract_strided_slice %7 {offsets = [0, 640], sizes = [8, 128], strides = [1, 1]} : vector<8x768xf32> to vector<8x128xf32>
    %14 = arith.negf %8 : vector<8x128xf32>
    %15 = math.exp %14 : vector<8x128xf32>
    %cst_5 = arith.constant 1.000000e+00 : f32
    %16 = vector.broadcast %cst_5 : f32 to vector<8x128xf32>
    %17 = arith.addf %16, %15 : vector<8x128xf32>
    %18 = arith.divf %16, %17 : vector<8x128xf32>
    %19 = arith.negf %9 : vector<8x128xf32>
    %20 = math.exp %19 : vector<8x128xf32>
    %cst_6 = arith.constant 1.000000e+00 : f32
    %21 = vector.broadcast %cst_6 : f32 to vector<8x128xf32>
    %22 = arith.addf %21, %20 : vector<8x128xf32>
    %23 = arith.divf %21, %22 : vector<8x128xf32>
    %24 = arith.negf %13 : vector<8x128xf32>
    %25 = math.exp %24 : vector<8x128xf32>
    %cst_7 = arith.constant 1.000000e+00 : f32
    %26 = vector.broadcast %cst_7 : f32 to vector<8x128xf32>
    %27 = arith.addf %26, %25 : vector<8x128xf32>
    %28 = arith.divf %26, %27 : vector<8x128xf32>
    %29 = arith.addf %10, %28 : vector<8x128xf32>
    %30 = arith.negf %29 : vector<8x128xf32>
    %31 = math.exp %30 : vector<8x128xf32>
    %cst_8 = arith.constant 1.000000e+00 : f32
    %32 = vector.broadcast %cst_8 : f32 to vector<8x128xf32>
    %33 = arith.addf %32, %31 : vector<8x128xf32>
    %34 = arith.divf %32, %33 : vector<8x128xf32>
    %35 = math.tanh %11 : vector<8x128xf32>
    %36 = arith.mulf %23, %1 : vector<8x128xf32>
    %37 = arith.mulf %18, %34 : vector<8x128xf32>
    %38 = arith.mulf %37, %35 : vector<8x128xf32>
    %39 = arith.addf %36, %38 : vector<8x128xf32>
    %40 = arith.truncf %39 : vector<8x128xf32> to vector<8x128xbf16>
    %c0_9 = arith.constant 0 : index
    %c0_10 = arith.constant 0 : index
    %41 = vector.load %arg4[%c0_9, %c0_10] : memref<128x128xbf16, #tpu.memory_space<vmem>>, vector<128x128xbf16>
    %cst_11 = arith.constant dense<0.000000e+00> : vector<8x128xf32>
    %42 = tpu.matmul %40, %41, %cst_11 {dimension_numbers = #tpu.dot_dimension_numbers<[1], [0], [0], [1], [0, 0, 1, 1], [], []>} : vector<8x128xbf16>, vector<128x128xbf16>, vector<8x128xf32> -> vector<8x128xf32>
    %c0_12 = arith.constant 0 : index
    %c0_13 = arith.constant 0 : index
    %43 = vector.load %arg5[%c0_12, %c0_13] : memref<1x128xf32, #tpu.memory_space<vmem>>, vector<1x128xf32>
    %44 = vector.broadcast %43 : vector<1x128xf32> to vector<8x128xf32>
    %45 = arith.addf %42, %44 : vector<8x128xf32>
    %46 = arith.addf %12, %45 : vector<8x128xf32>
    %47 = arith.negf %46 : vector<8x128xf32>
    %48 = math.exp %47 : vector<8x128xf32>
    %cst_14 = arith.constant 1.000000e+00 : f32
    %49 = vector.broadcast %cst_14 : f32 to vector<8x128xf32>
    %50 = arith.addf %49, %48 : vector<8x128xf32>
    %51 = arith.divf %49, %50 : vector<8x128xf32>
    %52 = math.tanh %39 : vector<8x128xf32>
    %53 = arith.mulf %51, %52 : vector<8x128xf32>
    %c0_15 = arith.constant 0 : index
    %c0_16 = arith.constant 0 : index
    %54 = vector.load %arg6[%c0_15, %c0_16] : memref<8x128xf32, #tpu.memory_space<vmem>>, vector<8x128xf32>
    tpu.vector_store %arg6[%c0_15, %c0_16], %53 {strides = array<i32>} : memref<8x128xf32, #tpu.memory_space<vmem>>, vector<8x128xf32>,
    %c0_17 = arith.constant 0 : index
    %c0_18 = arith.constant 0 : index
    %55 = vector.load %arg7[%c0_17, %c0_18] : memref<8x128xf32, #tpu.memory_space<vmem>>, vector<8x128xf32>
    tpu.vector_store %arg7[%c0_17, %c0_18], %39 {strides = array<i32>} : memref<8x128xf32, #tpu.memory_space<vmem>>, vector<8x128xf32>,
    return
  }
  func.func @transform_0(%arg0: i32) -> (i32, i32) {
    %c0_i32 = arith.constant 0 : i32
    %c0_i32_0 = arith.constant 0 : i32
    return %arg0, %c0_i32 : i32, i32
  }
  func.func @transform_1(%arg0: i32) -> (i32, i32) {
    %c0_i32 = arith.constant 0 : i32
    %c0_i32_0 = arith.constant 0 : i32
    %c0_i32_1 = arith.constant 0 : i32
    return %c0_i32, %c0_i32_0 : i32, i32
  }
  func.func @transform_2(%arg0: i32) -> (i32, i32) {
    %c0_i32 = arith.constant 0 : i32
    %c0_i32_0 = arith.constant 0 : i32
    %c0_i32_1 = arith.constant 0 : i32
    return %c0_i32, %c0_i32_0 : i32, i32
  }
  func.func @transform_3(%arg0: i32) -> (i32, i32) {
    %c0_i32 = arith.constant 0 : i32
    %c0_i32_0 = arith.constant 0 : i32
    %c0_i32_1 = arith.constant 0 : i32
    return %c0_i32, %c0_i32_0 : i32, i32
  }
  func.func @transform_4(%arg0: i32) -> (i32, i32) {
    %c0_i32 = arith.constant 0 : i32
    %c0_i32_0 = arith.constant 0 : i32
    %c0_i32_1 = arith.constant 0 : i32
    return %c0_i32, %c0_i32_0 : i32, i32
  }
  func.func @transform_5(%arg0: i32) -> (i32, i32) {
    %c0_i32 = arith.constant 0 : i32
    %c0_i32_0 = arith.constant 0 : i32
    return %arg0, %c0_i32 : i32, i32
  }
  func.func @transform_6(%arg0: i32) -> (i32, i32) {
    %c0_i32 = arith.constant 0 : i32
    %c0_i32_0 = arith.constant 0 : i32
    return %arg0, %c0_i32 : i32, i32
  }
}

</mosaic_0001>

<bundles_post_ra>
// kernel: time_lstm_cell.1
= control target key start
LH: loop header
LB: loop body
LE: loop exit
PB: predicated region body
PF: predicated region fallthrough
CT: control target
= control target key end

     0   :  { %12 = vsyncpa [#allocation3], 0  ;;  %s1498_s0 = inlined_call_operand.vmem [shape: f32[8,256], index: 0, kind: input, shape index: {}]   ;;  %s1499_s1 = inlined_call_operand.hbm [shape: bf16[256,768], index: 1, kind: input, shape index: {}]   ;;  %s1500_s2 = inlined_call_operand.vmem [shape: f32[1,768], index: 2, kind: input, shape index: {}]   ;;  %s1501_s3 = inlined_call_operand.vmem [shape: bf16[128,128], index: 3, kind: input, shape index: {}]   ;;  %s1502_s4 = inlined_call_operand.vmem [shape: f32[1,128], index: 4, kind: input, shape index: {}]   ;;  %s1503_s5 = inlined_call_operand.hbm [shape: f32[8,128], index: 5, kind: output, shape index: {0}]   ;;  %s1504_s6 = inlined_call_operand.hbm [shape: f32[8,128], index: 6, kind: output, shape index: {1}]  }
   0x1   :  { %13 = vsyncpa [#allocation4], 0 }
   0x2   :  { %14 = vsyncpa [#allocation7], 0  ;;  %s1350_s21 = smov [#allocation2]   ;;  %s1278_s25 = scalar_lea.hbm %s1499_s1, 12288 }
   0x3   :  { %s22_s22 = sshll.u32 %s1350_s21, 4  ;;  %p1279_p0 = scmp.ne.s32.totalorder %s1499_s1, %s1278_s25  ;;  %s23_s22 = int_to_ptr.vmem [resolvable:$true] %s22_s22 }
   0x4   :  { %p1282_p1 = scmp.lt.u32.totalorder %s1278_s25, %s1499_s1 }
   0x6   :  { %p1284_p2 = pnand %p1282_p1, %p1279_p0 }
   0x8   :  { %1287 = shalt.err (!%p1284_p2)
}
   0x9   :  { %s1288_s30 = scalar_lea.vmem %s23_s22, 12288  ;;  %p1293_p4 = scmp.lt.s32.totalorder %s23_s22, %s23_s22 }
   0xa   :  { %p1289_p3 = scmp.ne.s32.totalorder %s23_s22, %s1288_s30  ;;  %p1294_p5 = scmp.lt.s32.totalorder %s1288_s30, %s1288_s30 }
   0xc   :  { %p1295_p6 = por %p1294_p5, %p1293_p4 }
   0xe   :  { %p1296_p7 = pnand %p1295_p6, %p1289_p3 }
  0x10   :  { %1299 = shalt.err (!%p1296_p7)
}
  0x11   :  { %s1351_s7 = smov 384   ;;  %s1352_s8 = smov 24  }
  0x12   :  { %28 = dma.hbm_to_vmem [thread:$0]  %s1499_s1, 12288, %s23_s22, [#allocation3], %s1351_s7, %s1351_s7, %s1352_s8  }
  0x13   :  { %1344 = dma.done.wait [#allocation3], 12288  }
  0x14   :  { %1345 = vsyncadd [#allocation3], 4294955008  ;;  %v1102_v0 = vld [vmem:[#allocation2 + $0x4] ss:$24 sps:$4 sm:$0xff]   ;;  %v1104_v1 = vld [vmem:[#allocation2] ss:$24 sps:$4 sm:$0xff]  }
  0x15   :  { %651 = vmatprep.subr.bf16.mxu0 %v1102_v0  ;;  %v1105_v2 = vld [vmem:[#allocation2 + $0x34] ss:$24 sps:$4 sm:$0xff]   ;;  %v1107_v3 = vld [vmem:[#allocation2 + $0x30] ss:$24 sps:$4 sm:$0xff]   ;;  %v1108_v4 = vld [vmem:[#allocation2 + $0x64] ss:$24 sps:$4 sm:$0xff]  }
  0x16   :  { %652 = vmatpush1.bf16.msra.mxu0 %v1104_v1  ;;  %v1110_v5 = vld [vmem:[#allocation2 + $0x60] ss:$24 sps:$4 sm:$0xff]   ;;  %v1111_v6 = vld [vmem:[#allocation2 + $0x94] ss:$24 sps:$4 sm:$0xff]   ;;  %v1113_v7 = vld [vmem:[#allocation2 + $0x90] ss:$24 sps:$4 sm:$0xff]  }
  0x17   :  { %653 = vmatprep.subr.bf16.mxu0 %v1105_v2  ;;  %v1114_v8 = vld [vmem:[#allocation2 + $0xc4] ss:$24 sps:$4 sm:$0xff]   ;;  %v1116_v9 = vld [vmem:[#allocation2 + $0xc0] ss:$24 sps:$4 sm:$0xff]   ;;  %v1117_v10 = vld [vmem:[#allocation2 + $0xf4] ss:$24 sps:$4 sm:$0xff]  }
  0x18   :  { %v1119_v11 = vld [vmem:[#allocation2 + $0xf0] ss:$24 sps:$4 sm:$0xff]   ;;  %v1120_v12 = vld [vmem:[#allocation2 + $0x124] ss:$24 sps:$4 sm:$0xff]   ;;  %v1122_v15 = vld [vmem:[#allocation2 + $0x120] ss:$24 sps:$4 sm:$0xff]  }
  0x19   :  { %v40_v13 = vld [vmem:[%s1498_s0 + $0x8] sm:$0xff]  ;;  %v1126_v18 = vld [vmem:[#allocation2 + $0x184] ss:$24 sps:$4 sm:$0xff]   ;;  %v1128_v20 = vld [vmem:[#allocation2 + $0x180] ss:$24 sps:$4 sm:$0xff]   ;;  %vm1354_vm0 = vmmov 0  }
  0x1a   :  { %654 = vmatpush1.bf16.msra.mxu0 %v1107_v3  ;;  %v1407_v14 = vpack.c.bf16 %v40_v13, %v40_v13  ;;  %v1123_v16 = vld [vmem:[#allocation2 + $0x154] ss:$24 sps:$4 sm:$0xff]   ;;  %v1125_v17 = vld [vmem:[#allocation2 + $0x150] ss:$24 sps:$4 sm:$0xff]   ;;  %v1132_v25 = vld [vmem:[#allocation2 + $0x1e4] ss:$24 sps:$4 sm:$0xff]  }
  0x1b   :  { %655 = vmatprep.subr.bf16.mxu0 %v1108_v4  ;;  %v1168_v19 = vld [vmem:[#allocation2 + $0xc] ss:$24 sps:$4 sm:$0xff]   ;;  %v1173_v22 = vld [vmem:[#allocation2 + $0x8] ss:$24 sps:$4 sm:$0xff]   ;;  %v1174_v23 = vld [vmem:[#allocation2 + $0x3c] ss:$24 sps:$4 sm:$0xff]  }
  0x1c   :  { %683 = vmatprep.mubr.bf16.mxu0 %v1407_v14  ;;  %724 = vmatprep.mubr.bf16.mxu1 %v1407_v14  ;;  %v1129_v21 = vld [vmem:[#allocation2 + $0x1b4] ss:$24 sps:$4 sm:$0xff]   ;;  %v1131_v24 = vld [vmem:[#allocation2 + $0x1b0] ss:$24 sps:$4 sm:$0xff]   ;;  %v1134_v28 = vld [vmem:[#allocation2 + $0x1e0] ss:$24 sps:$4 sm:$0xff]  }
  0x1d   :  { %692 = vmatprep.subr.bf16.mxu1 %v1168_v19  ;;  %v1179_v26 = vld [vmem:[#allocation2 + $0x38] ss:$24 sps:$4 sm:$0xff]   ;;  %v1180_v27 = vld [vmem:[#allocation2 + $0x6c] ss:$24 sps:$4 sm:$0xff]   ;;  %v1185_v29 = vld [vmem:[#allocation2 + $0x68] ss:$24 sps:$4 sm:$0xff]  }
  0x1e   :  { %656 = vmatpush1.bf16.msra.mxu0 %v1110_v5  ;;  %693 = vmatpush1.bf16.msra.mxu1 %v1173_v22  ;;  %v1186_v30 = vld [vmem:[#allocation2 + $0x9c] ss:$24 sps:$4 sm:$0xff]   ;;  %v1137_v32 = vld [vmem:[#allocation2 + $0x210] ss:$24 sps:$4 sm:$0xff]   ;;  %v1192_v34 = vld [vmem:[#allocation2 + $0xcc] ss:$24 sps:$4 sm:$0xff]  }
  0x1f   :  { %657 = vmatprep.subr.bf16.mxu0 %v1111_v6  ;;  %694 = vmatprep.subr.bf16.mxu1 %v1174_v23  ;;  %v1135_v31 = vld [vmem:[#allocation2 + $0x214] ss:$24 sps:$4 sm:$0xff]   ;;  %v1191_v33 = vld [vmem:[#allocation2 + $0x98] ss:$24 sps:$4 sm:$0xff]   ;;  %v1138_v35 = vld [vmem:[#allocation2 + $0x244] ss:$24 sps:$4 sm:$0xff]  }
  0x20   :  { %v1140_v36 = vld [vmem:[#allocation2 + $0x240] ss:$24 sps:$4 sm:$0xff]   ;;  %v1198_v38 = vld [vmem:[#allocation2 + $0xfc] ss:$24 sps:$4 sm:$0xff]   ;;  %v1143_v40 = vld [vmem:[#allocation2 + $0x270] ss:$24 sps:$4 sm:$0xff]  }
  0x21   :  { %v1197_v37 = vld [vmem:[#allocation2 + $0xc8] ss:$24 sps:$4 sm:$0xff]   ;;  %v1141_v39 = vld [vmem:[#allocation2 + $0x274] ss:$24 sps:$4 sm:$0xff]   ;;  %v1203_v41 = vld [vmem:[#allocation2 + $0xf8] ss:$24 sps:$4 sm:$0xff]  }
  0x22   :  { %658 = vmatpush1.bf16.msra.mxu0 %v1113_v7  ;;  %695 = vmatpush1.bf16.msra.mxu1 %v1179_v26  ;;  %v1204_v42 = vld [vmem:[#allocation2 + $0x12c] ss:$24 sps:$4 sm:$0xff]   ;;  %v1146_v44 = vld [vmem:[#allocation2 + $0x2a0] ss:$24 sps:$4 sm:$0xff]   ;;  %v1210_v46 = vld [vmem:[#allocation2 + $0x15c] ss:$24 sps:$4 sm:$0xff]  }
  0x23   :  { %659 = vmatprep.subr.bf16.mxu0 %v1114_v8  ;;  %696 = vmatprep.subr.bf16.mxu1 %v1180_v27  ;;  %v1144_v43 = vld [vmem:[#allocation2 + $0x2a4] ss:$24 sps:$4 sm:$0xff]   ;;  %v1209_v45 = vld [vmem:[#allocation2 + $0x128] ss:$24 sps:$4 sm:$0xff]   ;;  %v1147_v47 = vld [vmem:[#allocation2 + $0x2d4] ss:$24 sps:$4 sm:$0xff]  }
  0x24   :  { %v1149_v48 = vld [vmem:[#allocation2 + $0x2d0] ss:$24 sps:$4 sm:$0xff]   ;;  %v1414_v49 = vld [vmem:[%s1498_s0] sm:$0xff]  ;;  %v1152_v52 = vld [vmem:[#allocation2 + $0x14] ss:$24 sps:$4 sm:$0xff]  }
  0x25   :  { %v1215_v50 = vld [vmem:[#allocation2 + $0x158] ss:$24 sps:$4 sm:$0xff]   ;;  %v1216_v51 = vld [vmem:[#allocation2 + $0x18c] ss:$24 sps:$4 sm:$0xff]   ;;  %v1418_v54 = vpack.c.bf16 %v1414_v49, %v1414_v49  ;;  %v1221_v55 = vld [vmem:[#allocation2 + $0x188] ss:$24 sps:$4 sm:$0xff]  }
  0x26   :  { %660 = vmatpush1.bf16.msra.mxu0 %v1116_v9  ;;  %697 = vmatpush1.bf16.msra.mxu1 %v1185_v29  ;;  %v1150_v53 = vld [vmem:[#allocation2 + $0x10] ss:$24 sps:$4 sm:$0xff]   ;;  %v1222_v56 = vld [vmem:[#allocation2 + $0x1bc] ss:$24 sps:$4 sm:$0xff]   ;;  %v1153_v59 = vld [vmem:[#allocation2 + $0x40] ss:$24 sps:$4 sm:$0xff]  }
  0x27   :  { %661 = vmatprep.subr.bf16.mxu0 %v1117_v10  ;;  %698 = vmatprep.subr.bf16.mxu1 %v1186_v30  ;;  %v1155_v57 = vld [vmem:[#allocation2 + $0x44] ss:$24 sps:$4 sm:$0xff]   ;;  %v1227_v58 = vld [vmem:[#allocation2 + $0x1b8] ss:$24 sps:$4 sm:$0xff]   ;;  %v1158_v61 = vld [vmem:[#allocation2 + $0x74] ss:$24 sps:$4 sm:$0xff]  }
  0x28   :  { %v1228_v60 = vld [vmem:[#allocation2 + $0x1ec] ss:$24 sps:$4 sm:$0xff]   ;;  %v1230_v62 = vld [vmem:[#allocation2 + $0x1e8] ss:$24 sps:$4 sm:$0xff]   ;;  %v1231_v0 = vld [vmem:[#allocation2 + $0x21c] ss:$24 sps:$4 sm:$0xff]  }
  0x29   :  { %v1156_v63 = vld [vmem:[#allocation2 + $0x70] ss:$24 sps:$4 sm:$0xff]   ;;  %v1161_v1 = vld [vmem:[#allocation2 + $0xa4] ss:$24 sps:$4 sm:$0xff]   ;;  %v1159_v3 = vld [vmem:[#allocation2 + $0xa0] ss:$24 sps:$4 sm:$0xff]  }
  0x2a   :  { %662 = vmatpush1.bf16.msra.mxu0 %v1119_v11  ;;  %699 = vmatpush1.bf16.msra.mxu1 %v1191_v33  ;;  %v1233_v2 = vld [vmem:[#allocation2 + $0x218] ss:$24 sps:$4 sm:$0xff]   ;;  %v1234_v4 = vld [vmem:[#allocation2 + $0x24c] ss:$24 sps:$4 sm:$0xff]   ;;  %v1236_v6 = vld [vmem:[#allocation2 + $0x248] ss:$24 sps:$4 sm:$0xff]  }
  0x2b   :  { %663 = vmatprep.subr.bf16.mxu0 %v1120_v12  ;;  %700 = vmatprep.subr.bf16.mxu1 %v1192_v34  ;;  %v1164_v5 = vld [vmem:[#allocation2 + $0xd4] ss:$24 sps:$4 sm:$0xff]   ;;  %v1162_v7 = vld [vmem:[#allocation2 + $0xd0] ss:$24 sps:$4 sm:$0xff]   ;;  %v1167_v9 = vld [vmem:[#allocation2 + $0x104] ss:$24 sps:$4 sm:$0xff]  }
  0x2c   :  { %v1237_v8 = vld [vmem:[#allocation2 + $0x27c] ss:$24 sps:$4 sm:$0xff]   ;;  %v1239_v10 = vld [vmem:[#allocation2 + $0x278] ss:$24 sps:$4 sm:$0xff]   ;;  %v1240_v12 = vld [vmem:[#allocation2 + $0x2ac] ss:$24 sps:$4 sm:$0xff]  }
  0x2d   :  { %v1165_v11 = vld [vmem:[#allocation2 + $0x100] ss:$24 sps:$4 sm:$0xff]   ;;  %v1172_v13 = vld [vmem:[#allocation2 + $0x134] ss:$24 sps:$4 sm:$0xff]   ;;  %v1190_v22 = vld [vmem:[#allocation2 + $0x1c4] ss:$24 sps:$4 sm:$0xff]  }
  0x2e   :  { %664 = vmatpush1.bf16.msra.mxu0 %v1122_v15  ;;  %701 = vmatpush1.bf16.msra.mxu1 %v1197_v37  ;;  %v1170_v15 = vld [vmem:[#allocation2 + $0x130] ss:$24 sps:$4 sm:$0xff]   ;;  %v1176_v19 = vld [vmem:[#allocation2 + $0x160] ss:$24 sps:$4 sm:$0xff]   ;;  %v1202_v26 = vld [vmem:[#allocation2 + $0x224] ss:$24 sps:$4 sm:$0xff]  }
  0x2f   :  { %665 = vmatprep.subr.bf16.mxu0 %v1123_v16  ;;  %702 = vmatprep.subr.bf16.mxu1 %v1198_v38  ;;  %v1243_v16 = vld [vmem:[#allocation2 + $0x2dc] ss:$24 sps:$4 sm:$0xff]   ;;  %v1188_v23 = vld [vmem:[#allocation2 + $0x1c0] ss:$24 sps:$4 sm:$0xff]   ;;  %v1206_v29 = vld [vmem:[#allocation2 + $0x250] ss:$24 sps:$4 sm:$0xff]  }
  0x30   :  { %v1200_v27 = vld [vmem:[#allocation2 + $0x220] ss:$24 sps:$4 sm:$0xff]   ;;  %v1214_v30 = vld [vmem:[#allocation2 + $0x284] ss:$24 sps:$4 sm:$0xff]   ;;  %v1218_v33 = vld [vmem:[#allocation2 + $0x2b0] ss:$24 sps:$4 sm:$0xff]  }
  0x31   :  { %v1226_v34 = vld [vmem:[#allocation2 + $0x2e4] ss:$24 sps:$4 sm:$0xff]   ;;  %v1353_v37 = vmov 0.0   ;;  %v1247_v38 = vld [vmem:[%s1501_s3 + $0x8] sm:$0xff]  }
  0x32   :  { %666 = vmatpush1.bf16.msra.mxu0 %v1125_v17  ;;  %703 = vmatpush1.bf16.msra.mxu1 %v1203_v41  ;;  %v1178_v17 = vld [vmem:[#allocation2 + $0x164] ss:$24 sps:$4 sm:$0xff]  }
  0x33   :  { %667 = vmatprep.subr.bf16.mxu0 %v1126_v18  ;;  %704 = vmatprep.subr.bf16.mxu1 %v1204_v42  ;;  %v1245_v18 = vld [vmem:[#allocation2 + $0x2d8] ss:$24 sps:$4 sm:$0xff]   ;;  %v1250_v41 = vld [vmem:[%s1501_s3 + $0x20] sm:$0xff]   ;;  %v1251_v42 = vld [vmem:[%s1501_s3 + $0x28] sm:$0xff]  }
  0x36   :  { %668 = vmatpush1.bf16.msra.mxu0 %v1128_v20  ;;  %705 = vmatpush1.bf16.msra.mxu1 %v1209_v45  ;;  %v1184_v20 = vld [vmem:[#allocation2 + $0x194] ss:$24 sps:$4 sm:$0xff]  }
  0x37   :  { %669 = vmatprep.subr.bf16.mxu0 %v1129_v21  ;;  %706 = vmatprep.subr.bf16.mxu1 %v1210_v46  ;;  %v1182_v21 = vld [vmem:[#allocation2 + $0x190] ss:$24 sps:$4 sm:$0xff]  }
  0x3a   :  { %670 = vmatpush1.bf16.msra.mxu0 %v1131_v24  ;;  %707 = vmatpush1.bf16.msra.mxu1 %v1215_v50  ;;  %v1196_v24 = vld [vmem:[#allocation2 + $0x1f4] ss:$24 sps:$4 sm:$0xff]  }
  0x3b   :  { %671 = vmatprep.subr.bf16.mxu0 %v1132_v25  ;;  %708 = vmatprep.subr.bf16.mxu1 %v1216_v51  ;;  %v1194_v25 = vld [vmem:[#allocation2 + $0x1f0] ss:$24 sps:$4 sm:$0xff]  }
  0x3e   :  { %672 = vmatpush1.bf16.msra.mxu0 %v1134_v28  ;;  %709 = vmatpush1.bf16.msra.mxu1 %v1221_v55  ;;  %v1208_v28 = vld [vmem:[#allocation2 + $0x254] ss:$24 sps:$4 sm:$0xff]  }
  0x3f   :  { %673 = vmatprep.subr.bf16.mxu0 %v1135_v31  ;;  %710 = vmatprep.subr.bf16.mxu1 %v1222_v56  ;;  %v1212_v31 = vld [vmem:[#allocation2 + $0x280] ss:$24 sps:$4 sm:$0xff]  }
  0x42   :  { %674 = vmatpush1.bf16.msra.mxu0 %v1137_v32  ;;  %711 = vmatpush1.bf16.msra.mxu1 %v1227_v58  ;;  %v1220_v32 = vld [vmem:[#allocation2 + $0x2b4] ss:$24 sps:$4 sm:$0xff]  }
  0x43   :  { %675 = vmatprep.subr.bf16.mxu0 %v1138_v35  ;;  %712 = vmatprep.subr.bf16.mxu1 %v1228_v60  ;;  %v1224_v35 = vld [vmem:[#allocation2 + $0x2e0] ss:$24 sps:$4 sm:$0xff]  }
  0x46   :  { %676 = vmatpush1.bf16.msra.mxu0 %v1140_v36  ;;  %713 = vmatpush1.bf16.msra.mxu1 %v1230_v62  ;;  %v1246_v36 = vld [vmem:[%s1501_s3] sm:$0xff]  }
  0x47   :  { %677 = vmatprep.subr.bf16.mxu0 %v1141_v39  ;;  %714 = vmatprep.subr.bf16.mxu1 %v1231_v0  ;;  %v1248_v39 = vld [vmem:[%s1501_s3 + $0x10] sm:$0xff]  }
  0x4a   :  { %678 = vmatpush1.bf16.msra.mxu0 %v1143_v40  ;;  %715 = vmatpush1.bf16.msra.mxu1 %v1233_v2  ;;  %v1249_v40 = vld [vmem:[%s1501_s3 + $0x18] sm:$0xff]  }
  0x4b   :  { %679 = vmatprep.subr.bf16.mxu0 %v1144_v43  ;;  %716 = vmatprep.subr.bf16.mxu1 %v1234_v4  ;;  %v1252_v43 = vld [vmem:[%s1501_s3 + $0x30] sm:$0xff]  }
  0x4e   :  { %680 = vmatpush1.bf16.msra.mxu0 %v1146_v44  ;;  %717 = vmatpush1.bf16.msra.mxu1 %v1236_v6  ;;  %v1253_v44 = vld [vmem:[%s1501_s3 + $0x38] sm:$0xff]  }
  0x4f   :  { %681 = vmatprep.subr.bf16.mxu0 %v1147_v47  ;;  %718 = vmatprep.subr.bf16.mxu1 %v1237_v8 }
  0x52   :  { %682 = vmatpush1.bf16.msra.mxu0 %v1149_v48  ;;  %719 = vmatpush1.bf16.msra.mxu1 %v1239_v10 }
  0x53   :  { %733 = vmatprep.subr.bf16.mxu0 %v1152_v52  ;;  %720 = vmatprep.subr.bf16.mxu1 %v1240_v12 }
  0x55   :  { %684 = vmatmul.mubr.bf16.vlgmr.msra.gmra.mrb[0].mxu0 %v1418_v54 }
  0x56   :  { %734 = vmatpush1.bf16.msra.mxu0 %v1150_v53  ;;  %765 = vmatprep.mubr.bf16.mxu0 %v1407_v14  ;;  %v1242_v14 = vld [vmem:[#allocation2 + $0x2a8] ss:$24 sps:$4 sm:$0xff]  }
  0x57   :  { %735 = vmatprep.subr.bf16.mxu0 %v1155_v57  ;;  %721 = vmatpush1.bf16.msra.mxu1 %v1242_v14  ;;  %v1454_v57 = vld [vmem:[%s1500_s2] sm:$0x3f]  ;;  %s1355_s2 = smov [#allocation6]  }
  0x58   :  { %722 = vmatprep.subr.bf16.mxu1 %v1243_v16  ;;  %s943_s3 = sshll.u32 %s1355_s2, 4  ;;  %s944_s3 = int_to_ptr.vmem [resolvable:$true] %s943_s3 }
  0x59   :  { %s1300_s7 = scalar_lea.vmem %s944_s3, 128  ;;  %p1305_p9 = scmp.lt.s32.totalorder %s944_s3, %s944_s3 }
  0x5a   :  { %736 = vmatpush1.bf16.msra.mxu0 %v1153_v59  ;;  %p1301_p8 = scmp.ne.s32.totalorder %s944_s3, %s1300_s7  ;;  %p1306_p10 = scmp.lt.s32.totalorder %s1300_s7, %s1300_s7 }
  0x5b   :  { %737 = vmatprep.subr.bf16.mxu0 %v1158_v61  ;;  %723 = vmatpush1.bf16.msra.mxu1 %v1245_v18 }
  0x5c   :  { %1075 = vmatprep.subr.bf16.mxu1 %v1353_v37  ;;  %p1307_p11 = por %p1306_p10, %p1305_p9 }
  0x5e   :  { %738 = vmatpush1.bf16.msra.mxu0 %v1156_v63  ;;  %725 = vmatmul.mubr.bf16.vlgmr.msra.gmra.mrb[0].mxu1 %v1418_v54  ;;  %p1308_p12 = pnand %p1307_p11, %p1301_p8 }
  0x5f   :  { %739 = vmatprep.subr.bf16.mxu0 %v1161_v1  ;;  %1076 = vmatpush3.bf16.msra.mxu1 %v1246_v36 }
  0x60   :  { %1077 = vmatprep.subr.bf16.mxu1 %v1353_v37  ;;  %1091 = vmatprep.mubr.msk.bf16.mxu1 %vm1354_vm0, %v1353_v37 }
  0x62   :  { %740 = vmatpush1.bf16.msra.mxu0 %v1159_v3 }
  0x63   :  { %741 = vmatprep.subr.bf16.mxu0 %v1164_v5  ;;  %1078 = vmatpush3.bf16.msra.mxu1 %v1247_v38 }
  0x64   :  { %1079 = vmatprep.subr.bf16.mxu1 %v1353_v37 }
  0x66   :  { %742 = vmatpush1.bf16.msra.mxu0 %v1162_v7 }
  0x67   :  { %743 = vmatprep.subr.bf16.mxu0 %v1167_v9  ;;  %1080 = vmatpush3.bf16.msra.mxu1 %v1248_v39 }
  0x68   :  { %1081 = vmatprep.subr.bf16.mxu1 %v1353_v37 }
  0x6a   :  { %744 = vmatpush1.bf16.msra.mxu0 %v1165_v11 }
  0x6b   :  { %745 = vmatprep.subr.bf16.mxu0 %v1172_v13  ;;  %1082 = vmatpush3.bf16.msra.mxu1 %v1249_v40 }
  0x6c   :  { %1083 = vmatprep.subr.bf16.mxu1 %v1353_v37 }
  0x6e   :  { %746 = vmatpush1.bf16.msra.mxu0 %v1170_v15 }
  0x6f   :  { %747 = vmatprep.subr.bf16.mxu0 %v1178_v17  ;;  %1084 = vmatpush3.bf16.msra.mxu1 %v1250_v41 }
  0x70   :  { %1085 = vmatprep.subr.bf16.mxu1 %v1353_v37 }
  0x72   :  { %748 = vmatpush1.bf16.msra.mxu0 %v1176_v19 }
  0x73   :  { %749 = vmatprep.subr.bf16.mxu0 %v1184_v20  ;;  %1086 = vmatpush3.bf16.msra.mxu1 %v1251_v42 }
  0x74   :  { %1087 = vmatprep.subr.bf16.mxu1 %v1353_v37 }
  0x76   :  { %750 = vmatpush1.bf16.msra.mxu0 %v1182_v21 }
  0x77   :  { %751 = vmatprep.subr.bf16.mxu0 %v1190_v22  ;;  %1088 = vmatpush3.bf16.msra.mxu1 %v1252_v43 }
  0x78   :  { %1089 = vmatprep.subr.bf16.mxu1 %v1353_v37 }
  0x7a   :  { %752 = vmatpush1.bf16.msra.mxu0 %v1188_v23 }
  0x7b   :  { %753 = vmatprep.subr.bf16.mxu0 %v1196_v24  ;;  %1090 = vmatpush3.bf16.msra.mxu1 %v1253_v44 }
  0x7e   :  { %754 = vmatpush1.bf16.msra.mxu0 %v1194_v25 }
  0x7f   :  { %755 = vmatprep.subr.bf16.mxu0 %v1202_v26 }
  0x82   :  { %756 = vmatpush1.bf16.msra.mxu0 %v1200_v27 }
  0x83   :  { %757 = vmatprep.subr.bf16.mxu0 %v1208_v28 }
  0x86   :  { %758 = vmatpush1.bf16.msra.mxu0 %v1206_v29 }
  0x87   :  { %759 = vmatprep.subr.bf16.mxu0 %v1214_v30 }
  0x8a   :  { %760 = vmatpush1.bf16.msra.mxu0 %v1212_v31 }
  0x8b   :  { %761 = vmatprep.subr.bf16.mxu0 %v1220_v32 }
  0x8e   :  { %762 = vmatpush1.bf16.msra.mxu0 %v1218_v33 }
  0x8f   :  { %763 = vmatprep.subr.bf16.mxu0 %v1226_v34 }
  0x92   :  { %764 = vmatpush1.bf16.msra.mxu0 %v1224_v35 }
  0x95   :  { %766 = vmatmul.mubr.bf16.vlgmr.msra.gmra.mrb[4].mxu0 %v1418_v54  ;;  %v141_v54 = vlaneseq }
  0x97   :  { %v1448_v55 = vshrl.u32 %v141_v54, 7 }
  0x99   :  { %v163_v56 = vsub.s32 5, %v1448_v55  ;;  %v143_v1 = vsub.s32 0, %v1448_v55  ;;  %v147_v2 = vsub.s32 1, %v1448_v55  ;;  %v151_v7 = vsub.s32 2, %v1448_v55 }
  0x9a   :  { %v155_v17 = vsub.s32 3, %v1448_v55 }
  0x9b   :  { %v164_v58 = vrot.slane %v1454_v57, %v163_v56  ;;  %v144_v4 = vrot.slane %v1454_v57, %v143_v1  ;;  %v148_v5 = vrot.slane %v1454_v57, %v147_v2  ;;  %v152_v10 = vrot.slane %v1454_v57, %v151_v7 }
  0x9c   :  { %v156_v21 = vrot.slane %v1454_v57, %v155_v17 }
 0x128   :  { %v685_v45 = vpop.f32.mrb[0].mxu0 }
 0x129   :  { %v687_v46 = vpop.f32.mrb[1].mxu0  ;;  %v686_v8 = vadd.f32 %v685_v45, %v144_v4 }
 0x12a   :  { %v689_v47 = vpop.f32.mrb[2].mxu0  ;;  %v688_v9 = vadd.f32 %v687_v46, %v148_v5 }
 0x12b   :  { %v690_v48 = vpop.f32.mrb[3].mxu0  ;;  %v1052_v11 = vmul.f32 -1.442695, %v686_v8 }
 0x12c   :  { %v1053_v12 = vmul.f32 -1.442695, %v688_v9 }
 0x131   :  { %v726_v50 = vpop.f32.mrb[0].mxu1 }
 0x132   :  { %v728_v51 = vpop.f32.mrb[1].mxu1  ;;  %v727_v13 = vadd.f32 %v726_v50, %v152_v10 }
 0x133   :  { %v730_v52 = vpop.f32.mrb[2].mxu1  ;;  %v729_v25 = vadd.f32 %v728_v51, %v156_v21 }
 0x134   :  { %v731_v53 = vpop.f32.mrb[3].mxu1 }
 0x168   :  { %v1457_v59 = vpop.f32.mrb[4].mxu0 }
 0x169   :  { %v769_v60 = vpop.f32.mrb[5].mxu0 }
 0x16a   :  { %v770_v61 = vadd.f32 %v769_v60, %v164_v58  ;;  %v771_v62 = vpop.f32.mrb[6].mxu0 }
 0x16b   :  { %v772_v63 = vpop.f32.mrb[7].mxu0 }
 0x16c   :  { %v1054_v0 = vmul.f32 -1.442695, %v770_v61 }
 0x16e   :  { %1254 = vpow2.f32 %v1054_v0 }
 0x178   :  { %v1255_v3 = vpop.eup %1254 }
 0x179   :  { %v789_v6 = vadd.f32 1.0, %v1255_v3 }
 0x17b   :  { %1256 = vrcp.f32 %v789_v6 }
 0x17c   :  { %1258 = vpow2.f32 %v1052_v11 }
 0x17d   :  { %1260 = vpow2.f32 %v1053_v12 }
 0x185   :  { %v1257_v14 = vpop.eup %1256 }
 0x186   :  { %v792_v15 = vadd.f32 %v1257_v14, %v727_v13  ;;  %v1259_v18 = vpop.eup %1258 }
 0x187   :  { %v1261_v19 = vpop.eup %1260  ;;  %v777_v20 = vadd.f32 1.0, %v1259_v18 }
 0x188   :  { %v1055_v16 = vmul.f32 -1.442695, %v792_v15  ;;  %v783_v22 = vadd.f32 1.0, %v1261_v19 }
 0x18a   :  { %1262 = vpow2.f32 %v1055_v16 }
 0x18b   :  { %1264 = vrcp.f32 %v777_v20 }
 0x18c   :  { %1266 = vrcp.f32 %v783_v22 }
 0x194   :  { %v1263_v23 = vpop.eup %1262 }
 0x195   :  { %v796_v24 = vadd.f32 1.0, %v1263_v23  ;;  %v1265_v26 = vpop.eup %1264 }
 0x196   :  { %v1267_v27 = vpop.eup %1266 }
 0x197   :  { %1268 = vrcp.f32 %v796_v24  ;;  %v800_v32 = vmul.f32 %v1267_v27, %v1414_v49 }
 0x198   :  { %1270 = vtanh.f32 %v729_v25 }
 0x1a1   :  { %v1269_v28 = vpop.eup %1268 }
 0x1a2   :  { %v801_v29 = vmul.f32 %v1269_v28, %v1265_v26  ;;  %v1271_v30 = vpop.eup %1270 }
 0x1a4   :  { %v802_v31 = vmul.f32 %v1271_v30, %v801_v29 }
 0x1a6   :  { %v803_v33 = vadd.f32 %v802_v31, %v800_v32 }
 0x1a8   :  { %v804_v34 = vpack.c.bf16 %v803_v33, %v803_v33  ;;  %926 = vst [vmem:[#allocation6] sm:$0xff] %v803_v33 }
 0x1aa   :  { %1092 = vmatmul.mubr.bf16.vlgmr.msra.gmra.mrb[4].mxu1 %v804_v34 }
 0x1ab   :  { %1311 = shalt.err (!%p1308_p12)
}
 0x1ac   :  { %s1312_s10 = scalar_lea.hbm %s1504_s6, 128 }
 0x1ad   :  { %p1313_p13 = scmp.ne.s32.totalorder %s1504_s6, %s1312_s10  ;;  %p1316_p0 = scmp.lt.u32.totalorder %s1312_s10, %s1504_s6 }
 0x1af   :  { %p1318_p1 = pnand %p1316_p0, %p1313_p13 }
 0x1b1   :  { %1321 = shalt.err (!%p1318_p1)
}
 0x1b2   :  { %946 = dma.vmem_to_hbm [thread:$0]  %s944_s3, 128, %s1504_s6, [#allocation7]   ;;  %v159_v49 = vsub.s32 4, %v1448_v55  ;;  %v1056_v36 = vld [vmem:[%s1502_s4] ss:$0 sm:$0xff] }
 0x1b3   :  { %s1356_s6 = smov [#allocation5]  }
 0x1b4   :  { %v160_v35 = vrot.slane %v1454_v57, %v159_v49  ;;  %s933_s17 = sshll.u32 %s1356_s6, 4  ;;  %s934_s17 = int_to_ptr.vmem [resolvable:$true] %s933_s17 }
 0x1b5   :  { %s1322_s4 = scalar_lea.vmem %s934_s17, 128  ;;  %p1327_p3 = scmp.lt.s32.totalorder %s934_s17, %s934_s17 }
 0x1b6   :  { %v768_v38 = vadd.f32 %v1457_v59, %v160_v35  ;;  %p1323_p2 = scmp.ne.s32.totalorder %s934_s17, %s1322_s4  ;;  %p1328_p4 = scmp.lt.s32.totalorder %s1322_s4, %s1322_s4 }
 0x1b8   :  { %p1329_p5 = por %p1328_p4, %p1327_p3 }
 0x1ba   :  { %p1330_p6 = pnand %p1329_p5, %p1323_p2 }
 0x27d   :  { %v910_v37 = vpop.f32.mrb[4].mxu1 }
 0x27e   :  { %v911_v39 = vadd.f32 %v1056_v36, %v910_v37  ;;  %v1093_v40 = vpop.f32.mrb[5].mxu1 }
 0x27f   :  { %v913_v41 = vpop.f32.mrb[6].mxu1 }
 0x280   :  { %v916_v42 = vadd.f32 %v911_v39, %v768_v38  ;;  %v1094_v43 = vpop.f32.mrb[7].mxu1 }
 0x282   :  { %v1065_v44 = vmul.f32 -1.442695, %v916_v42 }
 0x284   :  { %1272 = vpow2.f32 %v1065_v44 }
 0x285   :  { %1274 = vtanh.f32 %v803_v33 }
 0x28e   :  { %v1273_v45 = vpop.eup %1272 }
 0x28f   :  { %v920_v46 = vadd.f32 1.0, %v1273_v45  ;;  %v1275_v47 = vpop.eup %1274 }
 0x291   :  { %1276 = vrcp.f32 %v920_v46 }
 0x29b   :  { %v1277_v48 = vpop.eup %1276 }
 0x29c   :  { %v924_v50 = vmul.f32 %v1277_v48, %v1275_v47 }
 0x29e   :  { %925 = vst [vmem:[#allocation5] sm:$0xff] %v924_v50 }
 0x29f   :  { %1333 = shalt.err (!%p1330_p6)
}
 0x2a0   :  { %s1334_s20 = scalar_lea.hbm %s1503_s5, 128 }
 0x2a1   :  { %p1335_p7 = scmp.ne.s32.totalorder %s1503_s5, %s1334_s20  ;;  %p1338_p8 = scmp.lt.u32.totalorder %s1334_s20, %s1503_s5 }
 0x2a3   :  { %p1340_p9 = pnand %p1338_p8, %p1335_p7 }
 0x2a5   :  { %1343 = shalt.err (!%p1340_p9)
}
 0x2a6   :  { %936 = dma.vmem_to_hbm [thread:$0]  %s934_s17, 128, %s1503_s5, [#allocation4]  }
 0x2a7   :  { %1346 = dma.done.wait [#allocation4], 128  }
 0x2a8   :  { %1347 = vsyncadd [#allocation4], 4294967168 }
 0x2a9   :  { %1348 = dma.done.wait [#allocation7], 128  }
 0x2aa   :  { %1349 = vsyncadd [#allocation7], 4294967168 }
 0x2ab   :  { %953 = vsyncpa [#allocation3], 1 }
 0x2ac   :  { %954 = vsyncpa [#allocation4], 1 }
 0x2ad   :  { %955 = vsyncpa [#allocation7], 1 }

</bundles_post_ra>
